<compile_context>
chip_gen: v7x
topology: tpu7x:2x2x1
jax: 0.10.0
libtpu: 0.0.40
codegen_flags: <defaults>
</compile_context>

<pallas_src>
import functools
import math

import jax
import jax.numpy as jnp
from jax.experimental import pallas as pl
from jax.experimental.pallas import tpu as pltpu


def _round_up(x, m):
    return ((x + m - 1) // m) * m


# ---------------------------------------------------------------------------
# Shared elementwise math (used by the fused and the two-stage paths).
# ---------------------------------------------------------------------------
def _softplus(z):
    # Overflow-safe softplus == log1p(exp(z)).
    return jnp.maximum(z, 0.0) + jnp.log1p(jnp.exp(-jnp.abs(z)))


def _weight_transforms(wmu, wrho, lam):
    alpha_q = 1.0 / (1.0 + jnp.exp(-lam))             # sigmoid(lambdal)
    w_sigma = _softplus(wrho)
    e_w = wmu * alpha_q
    var_w = alpha_q * (w_sigma * w_sigma + (1.0 - alpha_q) * (wmu * wmu))
    return alpha_q, w_sigma, e_w, var_w


# KL(q || p); priors: weight mu=0, sigma=25, alpha=0.25; bias mu=0, sigma=1.
# log identities remove the per-element divides / extra logs:
#   log(sigma_prior / w_sigma)     = log(25) - log(w_sigma)
#   log(alpha_q / alpha_prior)     = log_sigmoid(lam)  - log(0.25)
#   log((1-alpha_q)/(1-alpha_pr))  = log_sigmoid(-lam) - log(0.75)
_LOG_SIGMA_PRIOR = math.log(25.0)
_LOG_ALPHA_PRIOR = math.log(0.25)
_LOG_1M_ALPHA_PRIOR = math.log(0.75)
_INV_TWO_SP2 = 1.0 / (2.0 * 25.0 * 25.0)


def _kl_weight_elems(wmu, lam, alpha_q, w_sigma):
    log_alpha = -_softplus(-lam)        # log(sigmoid(lam)),     stable
    log_1m_alpha = -_softplus(lam)      # log(1 - sigmoid(lam)), stable (no 0*inf NaN)
    return (alpha_q * (_LOG_SIGMA_PRIOR - jnp.log(w_sigma) - 0.5
                       + log_alpha - _LOG_ALPHA_PRIOR
                       + (w_sigma * w_sigma + wmu * wmu) * _INV_TWO_SP2)
            + (1.0 - alpha_q) * (log_1m_alpha - _LOG_1M_ALPHA_PRIOR))


def _kl_bias_elems(bmu, b_sigma):
    return -jnp.log(b_sigma) - 0.5 + (b_sigma * b_sigma + bmu * bmu) * 0.5


# ---------------------------------------------------------------------------
# Fused single-call fast path (small layers): transforms + KL + matmuls + sample.
# All f32, whole arrays (no grid, no padding needed since blocks == full arrays).
# ---------------------------------------------------------------------------
def _lrt_fused_kernel(x_ref, wmu_ref, wrho_ref, lam_ref, bmu_ref, brho_ref, eps_ref,
                      act_ref, kl_ref):
    wmu = wmu_ref[...]                 # (D, O), pre-transposed in the wrapper
    wrho = wrho_ref[...]
    lam = lam_ref[...]
    bmu = bmu_ref[...]                 # (1, O)
    brho = brho_ref[...]

    alpha_q, w_sigma, e_w, var_w = _weight_transforms(wmu, wrho, lam)
    b_sigma = _softplus(brho)

    x = x_ref[...]                     # (N, D) f32
    e_b = jnp.dot(x, e_w, preferred_element_type=jnp.float32) + bmu
    var_b = (jnp.dot(x * x, var_w, preferred_element_type=jnp.float32)
             + b_sigma * b_sigma)
    act_ref[...] = (e_b + jnp.sqrt(var_b) * eps_ref[...]).astype(act_ref.dtype)

    kl_ref[0, 0] = (jnp.sum(_kl_weight_elems(wmu, lam, alpha_q, w_sigma))
                    + jnp.sum(_kl_bias_elems(bmu, b_sigma)))


# ---------------------------------------------------------------------------
# Tiled path, Stage 1: parameter transforms (written padded + cast to the matmul
# dtype) and masked KL reduction, gridded over D with the KL carried in SMEM.
# ---------------------------------------------------------------------------
def _lrt_param_kernel(wmu_ref, wrho_ref, lam_ref, bmu_ref, brho_ref,
                      ew_ref, vw_ref, bvar_ref, kl_ref, *, d_valid, o_valid, td):
    i = pl.program_id(0)

    wmu = wmu_ref[...]                 # (td, o_p) f32, zero-padded
    wrho = wrho_ref[...]
    lam = lam_ref[...]

    alpha_q, w_sigma, e_w, var_w = _weight_transforms(wmu, wrho, lam)
    # Padded rows/cols of e_w / var_w only ever multiply zero-padded x columns or
    # land in output columns that are sliced off, so no masking of these is needed.
    ew_ref[...] = e_w.astype(ew_ref.dtype)
    vw_ref[...] = var_w.astype(vw_ref.dtype)

    # KL over the valid (un-padded) region only.
    row = jax.lax.broadcasted_iota(jnp.int32, wmu.shape, 0) + i * td
    col = jax.lax.broadcasted_iota(jnp.int32, wmu.shape, 1)
    wmask = jnp.where((row < d_valid) & (col < o_valid), 1.0, 0.0)
    kl_w_part = jnp.sum(wmask * _kl_weight_elems(wmu, lam, alpha_q, w_sigma))

    @pl.when(i == 0)
    def _():
        bmu = bmu_ref[...]             # (1, o_p)
        b_sigma = _softplus(brho_ref[...])
        bvar_ref[...] = b_sigma * b_sigma
        ocol = jax.lax.broadcasted_iota(jnp.int32, bmu.shape, 1)
        bmask = jnp.where(ocol < o_valid, 1.0, 0.0)
        kl_b = jnp.sum(bmask * _kl_bias_elems(bmu, b_sigma))
        kl_ref[0, 0] = kl_b + kl_w_part

    @pl.when(i > 0)
    def _():
        kl_ref[0, 0] = kl_ref[0, 0] + kl_w_part


def _pick_stage1_block(d_p, o_p, out_itemsize):
    """Largest D-block that divides d_p and keeps the Stage-1 working set ~<=16MiB."""
    # inputs: 3 f32 arrays, double-buffered; outputs: 2 matmul-dtype arrays, double-buffered
    per_row = o_p * (3 * 4 * 2 + 2 * out_itemsize * 2)
    if d_p * per_row <= (16 << 20):
        return d_p
    for td in (512, 256, 128, 64, 32, 16, 8):
        if d_p % td == 0 and td * per_row <= (16 << 20):
            return td
    return 8  # d_p is always a multiple of 128, so 8 divides


# ---------------------------------------------------------------------------
# Tiled path, Stage 2: local-reparameterization matmul.
#   e_b   = x   @ e_w^T   + bias_mu
#   var_b = x^2 @ var_w^T + b_sigma^2
#   act   = e_b + sqrt(var_b) * eps
# x is streamed in f32 (one DMA feeds both matmuls); squaring happens in f32, the
# MXU operands are cast to the weight dtype (bf16 by default), accumulation is f32.
# ---------------------------------------------------------------------------
def _lrt_matmul_kernel_1k(x_ref, ew_ref, vw_ref, bmu_ref, bvar_ref, eps_ref, act_ref):
    x = x_ref[...]                                            # (tm, tk) f32
    e_b = jnp.dot(x.astype(ew_ref.dtype), ew_ref[...],
                  preferred_element_type=jnp.float32) + bmu_ref[...]
    var_b = jnp.dot((x * x).astype(vw_ref.dtype), vw_ref[...],
                    preferred_element_type=jnp.float32) + bvar_ref[...]
    act_ref[...] = (e_b + jnp.sqrt(var_b) * eps_ref[...]).astype(act_ref.dtype)


def _lrt_matmul_kernel_mk(x_ref, ew_ref, vw_ref, bmu_ref, bvar_ref, eps_ref,
                          act_ref, acc_e_ref, acc_v_ref):
    k = pl.program_id(2)

    @pl.when(k == 0)
    def _():
        acc_e_ref[...] = jnp.zeros_like(acc_e_ref)
        acc_v_ref[...] = jnp.zeros_like(acc_v_ref)

    x = x_ref[...]                                            # (tm, tk) f32
    acc_e_ref[...] += jnp.dot(x.astype(ew_ref.dtype), ew_ref[...],
                              preferred_element_type=jnp.float32)
    acc_v_ref[...] += jnp.dot((x * x).astype(vw_ref.dtype), vw_ref[...],
                              preferred_element_type=jnp.float32)

    @pl.when(k == pl.num_programs(2) - 1)
    def _():
        e_b = acc_e_ref[...] + bmu_ref[...]                   # (tm,tn) + (1,tn)
        var_b = acc_v_ref[...] + bvar_ref[...]
        act_ref[...] = (e_b + jnp.sqrt(var_b) * eps_ref[...]).astype(act_ref.dtype)


# ---------------------------------------------------------------------------
# Wrapper.
# ---------------------------------------------------------------------------
def bayesian_linear_forward(x, weight_mu, weight_rho, lambdal,
                            bias_mu, bias_rho, eps,
                            matmul_dtype=jnp.bfloat16):
    """Training/sample-mode forward of BayesianLinear. Returns (activations, kl).

    matmul_dtype=jnp.bfloat16 (default) uses native bf16 MXU throughput with f32
    accumulation; matmul_dtype=jnp.float32 keeps full-precision operands.
    """
    f32 = jnp.float32
    n, d = x.shape
    o = weight_mu.shape[0]

    x = x.astype(f32)
    eps = eps.astype(f32)
    wmu_t = weight_mu.T.astype(f32)           # (D, O): non-transposed RHS for the MXU
    wrho_t = weight_rho.T.astype(f32)
    lam_t = lambdal.T.astype(f32)
    bmu2 = bias_mu.reshape(1, -1).astype(f32)
    brho2 = bias_rho.reshape(1, -1).astype(f32)

    # ---- Fused single-call fast path for small layers ------------------------
    small_bytes = (n * d + 2 * n * o + 3 * d * o) * 4
    if max(n, d, o) <= 1024 and small_bytes <= (2 << 20):
        vmem = pl.BlockSpec(memory_space=pltpu.MemorySpace.VMEM)
        smem = pl.BlockSpec(memory_space=pltpu.MemorySpace.SMEM)
        act, kl = pl.pallas_call(
            _lrt_fused_kernel,
            out_shape=(jax.ShapeDtypeStruct((n, o), f32),
                       jax.ShapeDtypeStruct((1, 1), f32)),
            in_specs=[vmem] * 7,
            out_specs=(vmem, smem),
        )(x, wmu_t, wrho_t, lam_t, bmu2, brho2, eps)
        return act, kl[0, 0]

    # ---- Tiled path: tile selection ------------------------------------------
    item = jnp.dtype(matmul_dtype).itemsize
    tm = min(512, _round_up(n, 16))
    tn = min(512, _round_up(o, 128))
    tk_single_cap = 2048 if item == 2 else 1024
    d_aligned = _round_up(d, 128)
    single_k = d_aligned <= tk_single_cap
    tk = d_aligned if single_k else 512

    n_p, o_p, d_p = _round_up(n, tm), _round_up(o, tn), _round_up(d, tk)

    # ---- Stage 1: transforms + masked KL (once per forward) ------------------
    wmu_p = jnp.pad(wmu_t, ((0, d_p - d), (0, o_p - o)))
    wrho_p = jnp.pad(wrho_t, ((0, d_p - d), (0, o_p - o)))
    lam_p = jnp.pad(lam_t, ((0, d_p - d), (0, o_p - o)))
    bmu_p = jnp.pad(bmu2, ((0, 0), (0, o_p - o)))
    brho_p = jnp.pad(brho2, ((0, 0), (0, o_p - o)))

    td = _pick_stage1_block(d_p, o_p, item)
    gd = d_p // td
    param_kernel = functools.partial(_lrt_param_kernel, d_valid=d, o_valid=o, td=td)

    ew_p, vw_p, bvar_p, kl = pl.pallas_call(
        param_kernel,
        out_shape=(jax.ShapeDtypeStruct((d_p, o_p), matmul_dtype),   # e_w^T, padded
                   jax.ShapeDtypeStruct((d_p, o_p), matmul_dtype),   # var_w^T, padded
                   jax.ShapeDtypeStruct((1, o_p), f32),              # b_sigma^2
                   jax.ShapeDtypeStruct((1, 1), f32)),               # KL scalar (SMEM)
        grid_spec=pltpu.PrefetchScalarGridSpec(
            num_scalar_prefetch=0,
            grid=(gd,),
            in_specs=[
                pl.BlockSpec((td, o_p), lambda i: (i, 0)),
                pl.BlockSpec((td, o_p), lambda i: (i, 0)),
                pl.BlockSpec((td, o_p), lambda i: (i, 0)),
                pl.BlockSpec((1, o_p), lambda i: (0, 0)),
                pl.BlockSpec((1, o_p), lambda i: (0, 0)),
            ],
            out_specs=(
                pl.BlockSpec((td, o_p), lambda i: (i, 0)),
                pl.BlockSpec((td, o_p), lambda i: (i, 0)),
                pl.BlockSpec((1, o_p), lambda i: (0, 0)),
                pl.BlockSpec((1, 1), lambda i: (0, 0),
                             memory_space=pltpu.MemorySpace.SMEM),
            ),
        ),
        compiler_params=pltpu.CompilerParams(
            dimension_semantics=("arbitrary",),
            vmem_limit_bytes=48 * 1024 * 1024),
    )(wmu_p, wrho_p, lam_p, bmu_p, brho_p)

    # ---- Stage 2: batch-tiled matmul ------------------------------------------
    # Zero padding is exact: padded K rows of x contribute 0 to both matmuls; padded
    # output rows/cols are sliced off below.
    x_p = jnp.pad(x, ((0, n_p - n), (0, d_p - d)))           # stays f32 (see header)
    eps_p = jnp.pad(eps, ((0, n_p - n), (0, o_p - o)))

    cost = pl.CostEstimate(
        flops=2 * 2 * n_p * d_p * o_p,
        transcendentals=n_p * o_p,
        bytes_accessed=(4 * n_p * d_p + 2 * item * d_p * o_p + 2 * 4 * n_p * o_p))
    cparams = pltpu.CompilerParams(
        dimension_semantics=(("parallel", "parallel") if single_k
                             else ("parallel", "parallel", "arbitrary")),
        vmem_limit_bytes=48 * 1024 * 1024)

    if single_k:
        grid = (n_p // tm, o_p // tn)
        act_p = pl.pallas_call(
            _lrt_matmul_kernel_1k,
            out_shape=jax.ShapeDtypeStruct((n_p, o_p), f32),
            grid_spec=pltpu.PrefetchScalarGridSpec(
                num_scalar_prefetch=0,
                grid=grid,
                in_specs=[
                    pl.BlockSpec((tm, tk), lambda i, j: (i, 0)),   # x (f32)
                    pl.BlockSpec((tk, tn), lambda i, j: (0, j)),   # e_w^T
                    pl.BlockSpec((tk, tn), lambda i, j: (0, j)),   # var_w^T
                    pl.BlockSpec((1, tn), lambda i, j: (0, j)),    # bias_mu
                    pl.BlockSpec((1, tn), lambda i, j: (0, j)),    # b_sigma^2
                    pl.BlockSpec((tm, tn), lambda i, j: (i, j)),   # eps
                ],
                out_specs=pl.BlockSpec((tm, tn), lambda i, j: (i, j)),
            ),
            compiler_params=cparams,
            cost_estimate=cost,
        )(x_p, ew_p, vw_p, bmu_p, bvar_p, eps_p)
    else:
        grid = (n_p // tm, o_p // tn, d_p // tk)
        act_p = pl.pallas_call(
            _lrt_matmul_kernel_mk,
            out_shape=jax.ShapeDtypeStruct((n_p, o_p), f32),
            grid_spec=pltpu.PrefetchScalarGridSpec(
                num_scalar_prefetch=0,
                grid=grid,
                in_specs=[
                    pl.BlockSpec((tm, tk), lambda i, j, k: (i, k)),   # x (f32)
                    pl.BlockSpec((tk, tn), lambda i, j, k: (k, j)),   # e_w^T
                    pl.BlockSpec((tk, tn), lambda i, j, k: (k, j)),   # var_w^T
                    pl.BlockSpec((1, tn), lambda i, j, k: (0, j)),    # bias_mu
                    pl.BlockSpec((1, tn), lambda i, j, k: (0, j)),    # b_sigma^2
                    pl.BlockSpec((tm, tn), lambda i, j, k: (i, j)),   # eps
                ],
                out_specs=pl.BlockSpec((tm, tn), lambda i, j, k: (i, j)),
                scratch_shapes=[pltpu.VMEM((tm, tn), jnp.float32),    # e_b accumulator
                                pltpu.VMEM((tm, tn), jnp.float32)],   # var_b accumulator
            ),
            compiler_params=cparams,
            cost_estimate=cost,
        )(x_p, ew_p, vw_p, bmu_p, bvar_p, eps_p)

    return act_p[:n, :o], kl[0, 0]


# ---------------------------------------------------------------------------
# Pure-JAX reference matching the PyTorch forward (training/sample branch).
# ---------------------------------------------------------------------------
def _reference(x, weight_mu, weight_rho, lambdal, bias_mu, bias_rho, eps):
    alpha_q = jax.nn.sigmoid(lambdal)
    w_sigma = jnp.log1p(jnp.exp(weight_rho))
    b_sigma = jnp.log1p(jnp.exp(bias_rho))
    e_w = weight_mu * alpha_q
    var_w = alpha_q * (w_sigma ** 2 + (1.0 - alpha_q) * weight_mu ** 2)
    e_b = x @ e_w.T + bias_mu
    var_b = (x ** 2) @ var_w.T + b_sigma ** 2
    act = e_b + jnp.sqrt(var_b) * eps
    kl_bias = jnp.sum(jnp.log(1.0 / b_sigma) - 0.5 + (b_sigma ** 2 + bias_mu ** 2) / 2.0)
    kl_w = jnp.sum(
        alpha_q * (jnp.log(25.0 / w_sigma) - 0.5 + jnp.log(alpha_q / 0.25)
                   + (w_sigma ** 2 + weight_mu ** 2) / (2.0 * 25.0 ** 2))
        + (1.0 - alpha_q) * jnp.log((1.0 - alpha_q) / 0.75))
    return act, kl_bias + kl_w


if __name__ == "__main__":
    def run_case(name, batch, in_features, out_features, matmul_dtype, act_tol):
        key = jax.random.PRNGKey(0)
        ks = jax.random.split(key, 7)
        # Deterministic parameter init mirroring the module's __init__ ranges.
        weight_mu = jax.random.uniform(ks[0], (out_features, in_features),
                                       minval=-0.01, maxval=0.01)
        weight_rho = jax.random.uniform(ks[1], (out_features, in_features),
                                        minval=-5.0, maxval=-4.0)
        lambdal = jax.random.uniform(ks[2], (out_features, in_features),
                                     minval=0.0, maxval=1.0)
        bias_mu = jax.random.uniform(ks[3], (out_features,), minval=-0.01, maxval=0.01)
        bias_rho = jax.random.uniform(ks[4], (out_features,), minval=-5.0, maxval=-4.0)
        x = jax.random.normal(ks[5], (batch, in_features), dtype=jnp.float32)
        eps = jax.random.normal(ks[6], (batch, out_features), dtype=jnp.float32)

        act, kl = bayesian_linear_forward(x, weight_mu, weight_rho, lambdal,
                                          bias_mu, bias_rho, eps,
                                          matmul_dtype=matmul_dtype)
        jax.block_until_ready((act, kl))

        act_ref, kl_ref = _reference(x, weight_mu, weight_rho, lambdal,
                                     bias_mu, bias_rho, eps)
        assert act.shape == act_ref.shape, f"{name}: shape mismatch"
        max_err = float(jnp.max(jnp.abs(act - act_ref)))
        assert jnp.allclose(act, act_ref, atol=act_tol, rtol=act_tol), \
            f"{name}: activation mismatch (max abs err {max_err})"
        assert jnp.allclose(kl, kl_ref, rtol=5e-4, atol=1e-3), \
            f"{name}: kl mismatch ({float(kl)} vs {float(kl_ref)})"

    # Abalone-like tiny layer -> fused single-call fast path (all f32).
    run_case("fused_small", 8, 8, 16, jnp.float32, 1e-3)
    # Larger layer -> two-stage tiled path, bf16 MXU operands, single-K kernel,
    # 2x2 batch/out-feature grid (megacore-parallel axes).
    run_case("tiled_bf16_singlek", 768, 384, 640, jnp.bfloat16, 2e-2)
    # Wide contraction -> multi-K accumulator kernel (f32 operands) and a
    # multi-block Stage-1 with masked, SMEM-carried KL accumulation.
    run_case("tiled_f32_multik", 96, 1408, 640, jnp.float32, 2e-2)

    print("KERNEL_OK")
</pallas_src>

<mosaic_0001>
module attributes {stable_mosaic.version = 11 : i64} {
  func.func @_lrt_fused_kernel(%arg0: memref<8x8xf32, #tpu.memory_space<vmem>>, %arg1: memref<8x16xf32, #tpu.memory_space<vmem>>, %arg2: memref<8x16xf32, #tpu.memory_space<vmem>>, %arg3: memref<8x16xf32, #tpu.memory_space<vmem>>, %arg4: memref<1x16xf32, #tpu.memory_space<vmem>>, %arg5: memref<1x16xf32, #tpu.memory_space<vmem>>, %arg6: memref<8x16xf32, #tpu.memory_space<vmem>>, %arg7: memref<8x16xf32, #tpu.memory_space<vmem>>, %arg8: memref<1x1xf32, #tpu.memory_space<smem>>) attributes {dimension_semantics = [], scalar_prefetch = 0 : i64, scratch_operands = 0 : i64, tpu.core_type = #tpu.core_type<tc>} {
    %c0 = arith.constant 0 : index
    %c0_0 = arith.constant 0 : index
    %0 = vector.load %arg1[%c0, %c0_0] : memref<8x16xf32, #tpu.memory_space<vmem>>, vector<8x16xf32>
    %c0_1 = arith.constant 0 : index
    %c0_2 = arith.constant 0 : index
    %1 = vector.load %arg2[%c0_1, %c0_2] : memref<8x16xf32, #tpu.memory_space<vmem>>, vector<8x16xf32>
    %c0_3 = arith.constant 0 : index
    %c0_4 = arith.constant 0 : index
    %2 = vector.load %arg3[%c0_3, %c0_4] : memref<8x16xf32, #tpu.memory_space<vmem>>, vector<8x16xf32>
    %c0_5 = arith.constant 0 : index
    %c0_6 = arith.constant 0 : index
    %3 = vector.load %arg4[%c0_5, %c0_6] : memref<1x16xf32, #tpu.memory_space<vmem>>, vector<1x16xf32>
    %c0_7 = arith.constant 0 : index
    %c0_8 = arith.constant 0 : index
    %4 = vector.load %arg5[%c0_7, %c0_8] : memref<1x16xf32, #tpu.memory_space<vmem>>, vector<1x16xf32>
    %cst = arith.constant 0.000000e+00 : f32
    %5 = vector.broadcast %cst : f32 to vector<8x16xf32>
    %6 = arith.subf %5, %2 : vector<8x16xf32>
    %7 = math.exp %6 : vector<8x16xf32>
    %cst_9 = arith.constant 1.000000e+00 : f32
    %8 = vector.broadcast %cst_9 : f32 to vector<8x16xf32>
    %9 = arith.addf %8, %7 : vector<8x16xf32>
    %cst_10 = arith.constant 1.000000e+00 : f32
    %10 = vector.broadcast %cst_10 : f32 to vector<8x16xf32>
    %11 = arith.divf %10, %9 : vector<8x16xf32>
    %cst_11 = arith.constant 0.000000e+00 : f32
    %12 = vector.broadcast %cst_11 : f32 to vector<8x16xf32>
    %13 = arith.maximumf %1, %12 : vector<8x16xf32>
    %14 = math.absf %1 : vector<8x16xf32>
    %cst_12 = arith.constant 0.000000e+00 : f32
    %15 = vector.broadcast %cst_12 : f32 to vector<8x16xf32>
    %16 = arith.subf %15, %14 : vector<8x16xf32>
    %17 = math.exp %16 : vector<8x16xf32>
    %18 = math.log1p %17 : vector<8x16xf32>
    %19 = arith.addf %13, %18 : vector<8x16xf32>
    %20 = arith.mulf %0, %11 : vector<8x16xf32>
    %21 = arith.mulf %19, %19 : vector<8x16xf32>
    %cst_13 = arith.constant 1.000000e+00 : f32
    %22 = vector.broadcast %cst_13 : f32 to vector<8x16xf32>
    %23 = arith.subf %22, %11 : vector<8x16xf32>
    %24 = arith.mulf %0, %0 : vector<8x16xf32>
    %25 = arith.mulf %23, %24 : vector<8x16xf32>
    %26 = arith.addf %21, %25 : vector<8x16xf32>
    %27 = arith.mulf %11, %26 : vector<8x16xf32>
    %cst_14 = arith.constant 0.000000e+00 : f32
    %28 = vector.broadcast %cst_14 : f32 to vector<1x16xf32>
    %29 = arith.maximumf %4, %28 : vector<1x16xf32>
    %30 = math.absf %4 : vector<1x16xf32>
    %cst_15 = arith.constant 0.000000e+00 : f32
    %31 = vector.broadcast %cst_15 : f32 to vector<1x16xf32>
    %32 = arith.subf %31, %30 : vector<1x16xf32>
    %33 = math.exp %32 : vector<1x16xf32>
    %34 = math.log1p %33 : vector<1x16xf32>
    %35 = arith.addf %29, %34 : vector<1x16xf32>
    %c0_16 = arith.constant 0 : index
    %c0_17 = arith.constant 0 : index
    %36 = vector.load %arg0[%c0_16, %c0_17] : memref<8x8xf32, #tpu.memory_space<vmem>>, vector<8x8xf32>
    %cst_18 = arith.constant dense<0.000000e+00> : vector<8x16xf32>
    %37 = tpu.matmul %36, %20, %cst_18 {dimension_numbers = #tpu.dot_dimension_numbers<[1], [0], [0], [1], [0, 0, 1, 1], [], []>} : vector<8x8xf32>, vector<8x16xf32>, vector<8x16xf32> -> vector<8x16xf32>
    %38 = vector.broadcast %3 : vector<1x16xf32> to vector<8x16xf32>
    %39 = arith.addf %37, %38 : vector<8x16xf32>
    %40 = arith.mulf %36, %36 : vector<8x8xf32>
    %cst_19 = arith.constant dense<0.000000e+00> : vector<8x16xf32>
    %41 = tpu.matmul %40, %27, %cst_19 {dimension_numbers = #tpu.dot_dimension_numbers<[1], [0], [0], [1], [0, 0, 1, 1], [], []>} : vector<8x8xf32>, vector<8x16xf32>, vector<8x16xf32> -> vector<8x16xf32>
    %42 = arith.mulf %35, %35 : vector<1x16xf32>
    %43 = vector.broadcast %42 : vector<1x16xf32> to vector<8x16xf32>
    %44 = arith.addf %41, %43 : vector<8x16xf32>
    %45 = math.sqrt %44 : vector<8x16xf32>
    %c0_20 = arith.constant 0 : index
    %c0_21 = arith.constant 0 : index
    %46 = vector.load %arg6[%c0_20, %c0_21] : memref<8x16xf32, #tpu.memory_space<vmem>>, vector<8x16xf32>
    %47 = arith.mulf %45, %46 : vector<8x16xf32>
    %48 = arith.addf %39, %47 : vector<8x16xf32>
    %c0_22 = arith.constant 0 : index
    %c0_23 = arith.constant 0 : index
    %49 = vector.load %arg7[%c0_22, %c0_23] : memref<8x16xf32, #tpu.memory_space<vmem>>, vector<8x16xf32>
    tpu.vector_store %arg7[%c0_22, %c0_23], %48 {strides = array<i32>} : memref<8x16xf32, #tpu.memory_space<vmem>>, vector<8x16xf32>,
    %cst_24 = arith.constant 0.000000e+00 : f32
    %50 = vector.broadcast %cst_24 : f32 to vector<8x16xf32>
    %51 = arith.subf %50, %2 : vector<8x16xf32>
    %cst_25 = arith.constant 0.000000e+00 : f32
    %52 = vector.broadcast %cst_25 : f32 to vector<8x16xf32>
    %53 = arith.maximumf %51, %52 : vector<8x16xf32>
    %54 = math.absf %51 : vector<8x16xf32>
    %cst_26 = arith.constant 0.000000e+00 : f32
    %55 = vector.broadcast %cst_26 : f32 to vector<8x16xf32>
    %56 = arith.subf %55, %54 : vector<8x16xf32>
    %57 = math.exp %56 : vector<8x16xf32>
    %58 = math.log1p %57 : vector<8x16xf32>
    %59 = arith.addf %53, %58 : vector<8x16xf32>
    %cst_27 = arith.constant 0.000000e+00 : f32
    %60 = vector.broadcast %cst_27 : f32 to vector<8x16xf32>
    %61 = arith.subf %60, %59 : vector<8x16xf32>
    %cst_28 = arith.constant 0.000000e+00 : f32
    %62 = vector.broadcast %cst_28 : f32 to vector<8x16xf32>
    %63 = arith.maximumf %2, %62 : vector<8x16xf32>
    %64 = math.absf %2 : vector<8x16xf32>
    %cst_29 = arith.constant 0.000000e+00 : f32
    %65 = vector.broadcast %cst_29 : f32 to vector<8x16xf32>
    %66 = arith.subf %65, %64 : vector<8x16xf32>
    %67 = math.exp %66 : vector<8x16xf32>
    %68 = math.log1p %67 : vector<8x16xf32>
    %69 = arith.addf %63, %68 : vector<8x16xf32>
    %cst_30 = arith.constant 0.000000e+00 : f32
    %70 = vector.broadcast %cst_30 : f32 to vector<8x16xf32>
    %71 = arith.subf %70, %69 : vector<8x16xf32>
    %72 = math.log %19 : vector<8x16xf32>
    %cst_31 = arith.constant 3.21887589 : f32
    %73 = vector.broadcast %cst_31 : f32 to vector<8x16xf32>
    %74 = arith.subf %73, %72 : vector<8x16xf32>
    %cst_32 = arith.constant 5.000000e-01 : f32
    %75 = vector.broadcast %cst_32 : f32 to vector<8x16xf32>
    %76 = arith.subf %74, %75 : vector<8x16xf32>
    %77 = arith.addf %76, %61 : vector<8x16xf32>
    %cst_33 = arith.constant -1.38629436 : f32
    %78 = vector.broadcast %cst_33 : f32 to vector<8x16xf32>
    %79 = arith.subf %77, %78 : vector<8x16xf32>
    %80 = arith.mulf %19, %19 : vector<8x16xf32>
    %81 = arith.mulf %0, %0 : vector<8x16xf32>
    %82 = arith.addf %80, %81 : vector<8x16xf32>
    %cst_34 = arith.constant 8.000000e-04 : f32
    %83 = vector.broadcast %cst_34 : f32 to vector<8x16xf32>
    %84 = arith.mulf %82, %83 : vector<8x16xf32>
    %85 = arith.addf %79, %84 : vector<8x16xf32>
    %86 = arith.mulf %11, %85 : vector<8x16xf32>
    %cst_35 = arith.constant 1.000000e+00 : f32
    %87 = vector.broadcast %cst_35 : f32 to vector<8x16xf32>
    %88 = arith.subf %87, %11 : vector<8x16xf32>
    %cst_36 = arith.constant -0.287682086 : f32
    %89 = vector.broadcast %cst_36 : f32 to vector<8x16xf32>
    %90 = arith.subf %71, %89 : vector<8x16xf32>
    %91 = arith.mulf %88, %90 : vector<8x16xf32>
    %92 = arith.addf %86, %91 : vector<8x16xf32>
    %93 = vector.shape_cast %92 : vector<8x16xf32> to vector<1x8x16xf32>
    %cst_37 = arith.constant dense<0.000000e+00> : vector<1xf32>
    %94 = vector.multi_reduction <add>, %93, %cst_37 [1, 2] : vector<1x8x16xf32> to vector<1xf32>
    %95 = vector.shape_cast %94 : vector<1xf32> to vector<1x1x1xf32>
    %96 = vector.extract %95[0, 0, 0] : f32 from vector<1x1x1xf32>
    %97 = math.log %35 : vector<1x16xf32>
    %cst_38 = arith.constant 0.000000e+00 : f32
    %98 = vector.broadcast %cst_38 : f32 to vector<1x16xf32>
    %99 = arith.subf %98, %97 : vector<1x16xf32>
    %cst_39 = arith.constant 5.000000e-01 : f32
    %100 = vector.broadcast %cst_39 : f32 to vector<1x16xf32>
    %101 = arith.subf %99, %100 : vector<1x16xf32>
    %102 = arith.mulf %35, %35 : vector<1x16xf32>
    %103 = arith.mulf %3, %3 : vector<1x16xf32>
    %104 = arith.addf %102, %103 : vector<1x16xf32>
    %cst_40 = arith.constant 5.000000e-01 : f32
    %105 = vector.broadcast %cst_40 : f32 to vector<1x16xf32>
    %106 = arith.mulf %104, %105 : vector<1x16xf32>
    %107 = arith.addf %101, %106 : vector<1x16xf32>
    %108 = vector.shape_cast %107 : vector<1x16xf32> to vector<1x1x16xf32>
    %cst_41 = arith.constant dense<0.000000e+00> : vector<1xf32>
    %109 = vector.multi_reduction <add>, %108, %cst_41 [1, 2] : vector<1x1x16xf32> to vector<1xf32>
    %110 = vector.shape_cast %109 : vector<1xf32> to vector<1x1x1xf32>
    %111 = vector.extract %110[0, 0, 0] : f32 from vector<1x1x1xf32>
    %112 = arith.addf %96, %111 : f32
    %c0_42 = arith.constant 0 : index
    %c0_43 = arith.constant 0 : index
    %113 = memref.load %arg8[%c0_42, %c0_43] : memref<1x1xf32, #tpu.memory_space<smem>>
    memref.store %112, %arg8[%c0_42, %c0_43] : memref<1x1xf32, #tpu.memory_space<smem>>
    return
  }
}

</mosaic_0001>

<bundles_post_ra>
// kernel: tpu_custom_call.1
= control target key start
LH: loop header
LB: loop body
LE: loop exit
PB: predicated region body
PF: predicated region fallthrough
CT: control target
= control target key end

     0   :  { %14 = vsyncpa [#allocation3], 0  ;;  %s718_s0 = inlined_call_operand.hbm [shape: f32[8,8], index: 0, kind: input, shape index: {}]   ;;  %s719_s1 = inlined_call_operand.hbm [shape: f32[8,16], index: 1, kind: input, shape index: {}]   ;;  %s720_s2 = inlined_call_operand.hbm [shape: f32[8,16], index: 2, kind: input, shape index: {}]   ;;  %s721_s3 = inlined_call_operand.vmem [shape: f32[8,16], index: 3, kind: input, shape index: {}]   ;;  %s722_s4 = inlined_call_operand.vmem [shape: f32[1,16], index: 4, kind: input, shape index: {}]   ;;  %s723_s5 = inlined_call_operand.vmem [shape: f32[1,16], index: 5, kind: input, shape index: {}]   ;;  %s724_s6 = inlined_call_operand.vmem [shape: f32[8,16], index: 6, kind: input, shape index: {}]   ;;  %s725_s7 = inlined_call_operand.hbm [shape: f32[8,16], index: 7, kind: output, shape index: {0}]   ;;  %s726_s8 = inlined_call_operand.hbm [shape: f32[1,1], index: 8, kind: output, shape index: {1}]  }
   0x1   :  { %15 = vsyncpa [#allocation7], 0 }
   0x2   :  { %16 = vsyncpa [#allocation4], 0 }
   0x3   :  { %17 = vsyncpa [#allocation5], 0  ;;  %s556_s27 = smov [#allocation6]   ;;  %s557_s29 = smov [#allocation2]  }
   0x4   :  { %s34_s28 = sshll.u32 %s556_s27, 4  ;;  %s24_s30 = sshll.u32 %s557_s29, 4  ;;  %s35_s28 = int_to_ptr.vmem [resolvable:$true] %s34_s28  ;;  %s25_s30 = int_to_ptr.vmem [resolvable:$true] %s24_s30 }
   0x5   :  { %s450_s11 = scalar_lea.hbm %s719_s1, 128 }
   0x6   :  { %p451_p0 = scmp.ne.s32.totalorder %s719_s1, %s450_s11  ;;  %p454_p1 = scmp.lt.u32.totalorder %s450_s11, %s719_s1 }
   0x8   :  { %p456_p2 = pnand %p454_p1, %p451_p0 }
   0xa   :  { %459 = shalt.err (!%p456_p2)
}
   0xb   :  { %s460_s16 = scalar_lea.vmem %s35_s28, 128  ;;  %p465_p4 = scmp.lt.s32.totalorder %s35_s28, %s35_s28 }
   0xc   :  { %p461_p3 = scmp.ne.s32.totalorder %s35_s28, %s460_s16  ;;  %p466_p5 = scmp.lt.s32.totalorder %s460_s16, %s460_s16 }
   0xe   :  { %p467_p6 = por %p466_p5, %p465_p4 }
  0x10   :  { %p468_p7 = pnand %p467_p6, %p461_p3 }
  0x12   :  { %471 = shalt.err (!%p468_p7)
}
  0x13   :  { %37 = dma.hbm_to_vmem [thread:$0]  %s719_s1, 128, %s35_s28, [#allocation7]  }
  0x14   :  { %s472_s21 = scalar_lea.hbm %s718_s0, 128 }
  0x15   :  { %p473_p8 = scmp.ne.s32.totalorder %s718_s0, %s472_s21  ;;  %p476_p9 = scmp.lt.u32.totalorder %s472_s21, %s718_s0 }
  0x17   :  { %p478_p10 = pnand %p476_p9, %p473_p8 }
  0x19   :  { %481 = shalt.err (!%p478_p10)
}
  0x1a   :  { %s482_s26 = scalar_lea.vmem %s25_s30, 128  ;;  %p487_p12 = scmp.lt.s32.totalorder %s25_s30, %s25_s30 }
  0x1b   :  { %p483_p11 = scmp.ne.s32.totalorder %s25_s30, %s482_s26  ;;  %p488_p13 = scmp.lt.s32.totalorder %s482_s26, %s482_s26 }
  0x1d   :  { %p489_p0 = por %p488_p13, %p487_p12 }
  0x1f   :  { %p490_p1 = pnand %p489_p0, %p483_p11 }
  0x21   :  { %493 = shalt.err (!%p490_p1)
}
  0x22   :  { %27 = dma.hbm_to_vmem [thread:$0]  %s718_s0, 128, %s25_s30, [#allocation3]  }
  0x23   :  { %s558_s28 = smov [#allocation8]   ;;  %s494_s11 = scalar_lea.hbm %s720_s2, 128 }
  0x24   :  { %s44_s29 = sshll.u32 %s558_s28, 4  ;;  %p495_p2 = scmp.ne.s32.totalorder %s720_s2, %s494_s11  ;;  %s45_s29 = int_to_ptr.vmem [resolvable:$true] %s44_s29 }
  0x25   :  { %p498_p3 = scmp.lt.u32.totalorder %s494_s11, %s720_s2 }
  0x27   :  { %p500_p4 = pnand %p498_p3, %p495_p2 }
  0x29   :  { %503 = shalt.err (!%p500_p4)
}
  0x2a   :  { %s504_s16 = scalar_lea.vmem %s45_s29, 128  ;;  %p509_p6 = scmp.lt.s32.totalorder %s45_s29, %s45_s29 }
  0x2b   :  { %p505_p5 = scmp.ne.s32.totalorder %s45_s29, %s504_s16  ;;  %p510_p7 = scmp.lt.s32.totalorder %s504_s16, %s504_s16 }
  0x2d   :  { %p511_p8 = por %p510_p7, %p509_p6 }
  0x2f   :  { %p512_p9 = pnand %p511_p8, %p505_p5 }
  0x31   :  { %515 = shalt.err (!%p512_p9)
}
  0x32   :  { %47 = dma.hbm_to_vmem [thread:$0]  %s720_s2, 128, %s45_s29, [#allocation7]  }
  0x33   :  { %548 = dma.done.wait [#allocation3], 128  }
  0x34   :  { %549 = vsyncadd [#allocation3], 4294967168 }
  0x35   :  { %550 = dma.done.wait [#allocation7], 256  }
  0x36   :  { %551 = vsyncadd [#allocation7], 4294967040  ;;  %v559_v0 = vmov 0.0   ;;  %vm560_vm0 = vmmov 0   ;;  %v644_v1 = vld [vmem:[#allocation8] sm:$0xff]  ;;  %v649_v2 = vld [vmem:[%s721_s3] sm:$0xff] }
  0x37   :  { %408 = vmatprep.subr.mxu1 %v559_v0  ;;  %410 = vmatprep.mubr.msk.f32.mxu1 %vm560_vm0, %v559_v0  ;;  %v652_v3 = vsub.f32 0.0, %v649_v2  ;;  %v77_v4 = vand.u32 2147483647, %v644_v1  ;;  %v304_v5 = vand.u32 2147483647, %v649_v2  ;;  %v65_v30 = vld [vmem:[#allocation6] sm:$0xff] }
  0x38   :  { %403 = vmatprep.subr.mxu0 %v559_v0  ;;  %405 = vmatprep.mubr.msk.f32.mxu0 %vm560_vm0, %v559_v0  ;;  %v661_v10 = vld [vmem:[%s723_s5] sm:$0x1]  ;;  %v76_v34 = vmax.f32 %v644_v1, 0.0  ;;  %v94_v36 = vmul.f32 %v65_v30, %v65_v30  ;;  %vm120_vm2 = vcmask 64512   ;;  %vm285_vm6 = vcmask 130048   ;;  %s561_s23 = smov [#allocation9]  }
  0x39   :  { %v71_v6 = vmul.f32 1.442695, %v652_v3  ;;  %v78_v7 = vsub.f32 0.0, %v77_v4  ;;  %v288_v8 = vand.u32 2147483647, %v652_v3  ;;  %v305_v9 = vsub.f32 0.0, %v304_v5 }
  0x3a   :  { %v99_v14 = vand.u32 2147483647, %v661_v10  ;;  %v113_v44 = vld [vmem:[#allocation2] sm:$0xff]  ;;  %v98_v57 = vmax.f32 %v661_v10, 0.0  ;;  %vm350_vm7 = vcmask 122880   ;;  %s370_s24 = sshll.u32 %s561_s23, 4  ;;  %s371_s24 = int_to_ptr.vmem [resolvable:$true] %s370_s24 }
  0x3b   :  { %424 = vpow2.f32 %v71_v6  ;;  %v79_v11 = vmul.f32 1.442695, %v78_v7  ;;  %v289_v12 = vsub.f32 0.0, %v288_v8  ;;  %v306_v13 = vmul.f32 1.442695, %v305_v9  ;;  %s516_s27 = scalar_lea.hbm %s726_s8, 16 }
  0x3c   :  { %v100_v16 = vsub.f32 0.0, %v99_v14  ;;  %v194_v5 = vmul.f32 %v113_v44, %v113_v44  ;;  %v303_v8 = vmax.f32 %v649_v2, 0.0  ;;  %v287_v9 = vmax.f32 %v652_v3, 0.0  ;;  %v68_v14 = vld [vmem:[%s722_s4] sm:$0x1]  ;;  %p517_p10 = scmp.ne.s32.totalorder %s726_s8, %s516_s27  ;;  %p520_p11 = scmp.lt.u32.totalorder %s516_s27, %s726_s8 }
  0x3d   :  { %426 = vpow2.f32 %v79_v11  ;;  %v290_v15 = vmul.f32 1.442695, %v289_v12  ;;  %v346_v2 = vmul.f32 %v68_v14, %v68_v14 }
  0x3e   :  { %428 = vpow2.f32 %v306_v13  ;;  %v101_v17 = vmul.f32 1.442695, %v100_v16  ;;  %p522_p12 = pnand %p520_p11, %p517_p10 }
  0x3f   :  { %430 = vpow2.f32 %v290_v15 }
  0x40   :  { %432 = vpow2.f32 %v101_v17 }
  0x45   :  { %v425_v18 = vpop.eup %424 }
  0x46   :  { %v73_v19 = vadd.f32 1.0, %v425_v18 }
  0x47   :  { %v427_v20 = vpop.eup %426 }
  0x48   :  { %v429_v21 = vpop.eup %428  ;;  %434 = vrcp.f32 %v73_v19  ;;  %v81_v22 = vadd.f32 1.0, %v427_v20  ;;  %v84_v26 = vmul.f32 -0.5, %v427_v20  ;;  %v87_v31 = vand.u32 2147483647, %v427_v20 }
  0x49   :  { %v431_v23 = vpop.eup %430  ;;  %v308_v24 = vadd.f32 1.0, %v429_v21  ;;  %v311_v38 = vmul.f32 -0.5, %v429_v21  ;;  %v314_v49 = vand.u32 2147483647, %v429_v21 }
  0x4a   :  { %436 = vlog2.f32 %v81_v22  ;;  %v292_v25 = vadd.f32 1.0, %v431_v23  ;;  %v433_v27 = vpop.eup %432  ;;  %v85_v29 = vadd.f32 1.0, %v84_v26  ;;  %vm88_vm1 = vcmp.lt.f32.partialorder %v87_v31, 0.0004427343 }
  0x4b   :  { %438 = vlog2.f32 %v308_v24  ;;  %v103_v28 = vadd.f32 1.0, %v433_v27  ;;  %v106_v32 = vmul.f32 -0.5, %v433_v27  ;;  %v295_v41 = vmul.f32 -0.5, %v431_v23 }
  0x4c   :  { %440 = vlog2.f32 %v292_v25  ;;  %v86_v35 = vmul.f32 %v427_v20, %v85_v29  ;;  %v109_v45 = vand.u32 2147483647, %v433_v27  ;;  %v312_v48 = vadd.f32 1.0, %v311_v38 }
  0x4d   :  { %442 = vlog2.f32 %v103_v28  ;;  %v107_v42 = vadd.f32 1.0, %v106_v32  ;;  %v296_v53 = vadd.f32 1.0, %v295_v41  ;;  %v298_v56 = vand.u32 2147483647, %v431_v23 }
  0x4e   :  { %vm110_vm3 = vcmp.lt.f32.partialorder %v109_v45, 0.0004427343  ;;  %v313_v61 = vmul.f32 %v429_v21, %v312_v48  ;;  %vm673_vm4 = vcmp.lt.f32.partialorder %v314_v49, 0.0004427343 }
  0x4f   :  { %v108_v54 = vmul.f32 %v433_v27, %v107_v42  ;;  %v297_v1 = vmul.f32 %v431_v23, %v296_v53  ;;  %vm299_vm5 = vcmp.lt.f32.partialorder %v298_v56, 0.0004427343  ;;  %v115_v53 = vlaneseq }
  0x52   :  { %v664_v33 = vpop.eup %434 }
  0x53   :  { %v91_v37 = vmul.f32 %v664_v33, %v65_v30  ;;  %v93_v40 = vsub.f32 1.0, %v664_v33 }
  0x54   :  { %v437_v39 = vpop.eup %436 }
  0x55   :  { %v83_v43 = vmul.f32 0.6931472, %v437_v39  ;;  %404 = vmatpush3.msra.mxu0 %v91_v37  ;;  %v439_v46 = vpop.eup %438  ;;  %v95_v52 = vmul.f32 %v94_v36, %v93_v40 }
  0x56   :  { %406 = vmatmul.mubr.msk.f32.vlgmr.msra.gmra.mrb[0].mxu0 %vm120_vm2, %v113_v44  ;;  %v441_v50 = vpop.eup %440  ;;  %v310_v60 = vmul.f32 0.6931472, %v439_v46 }
  0x57   :  { %v89_v47 = vsel %vm88_vm1, %v86_v35, %v83_v43  ;;  %v443_v55 = vpop.eup %442  ;;  %v294_v0 = vmul.f32 0.6931472, %v441_v50 }
  0x58   :  { %v90_v51 = vadd.f32 %v89_v47, %v76_v34  ;;  %v105_v59 = vmul.f32 0.6931472, %v443_v55  ;;  %v316_v10 = vsel %vm673_vm4, %v313_v61, %v310_v60 }
  0x59   :  { %v300_v11 = vsel %vm299_vm5, %v297_v1, %v294_v0  ;;  %v317_v12 = vadd.f32 %v316_v10, %v303_v8 }
  0x5a   :  { %v92_v58 = vmul.f32 %v90_v51, %v90_v51  ;;  %444 = vlog2.f32 %v90_v51  ;;  %v111_v4 = vsel %vm110_vm3, %v108_v54, %v105_v59  ;;  %v301_v13 = vadd.f32 %v300_v11, %v287_v9 }
  0x5b   :  { %v112_v6 = vadd.f32 %v111_v4, %v98_v57  ;;  %v318_v17 = vsub.f32 0.0, %v317_v12  ;;  %v116_v54 = vshrl.u32 %v115_v53, 7  ;;  %v282_v4 = vld [vmem:[%s724_s6] sm:$0xff] }
  0x5c   :  { %v96_v63 = vadd.f32 %v95_v52, %v92_v58  ;;  %v325_v18 = vadd.f32 %v94_v36, %v92_v58  ;;  %v302_v3 = vsub.f32 0.0, %v301_v13 }
  0x5d   :  { %446 = vlog2.f32 %v112_v6  ;;  %v195_v20 = vmul.f32 %v112_v6, %v112_v6  ;;  %v397_v26 = vadd.f32 0.2876821, %v318_v17  ;;  %v117_v57 = vsub.s32 0, %v116_v54 }
  0x5e   :  { %v97_v7 = vmul.f32 %v664_v33, %v96_v63  ;;  %v326_v25 = vmul.f32 0.0008, %v325_v18 }
  0x5f   :  { %v347_v27 = vadd.f32 %v346_v2, %v195_v20  ;;  %v330_v31 = vmul.f32 %v397_v26, %v93_v40  ;;  %v200_v58 = vrot.slane %v195_v20, %v117_v57  ;;  %v118_v62 = vrot.slane %v68_v14, %v117_v57 }
  0x60   :  { %409 = vmatpush3.msra.mxu1 %v97_v7 }
  0x61   :  { %411 = vmatmul.mubr.msk.f32.vlgmr.msra.gmra.mrb[0].mxu1 %vm120_vm2, %v194_v5  ;;  %v348_v34 = vmul.f32 0.5, %v347_v27 }
  0x64   :  { %v445_v15 = vpop.eup %444 }
  0x65   :  { %v320_v16 = vmul.f32 0.6931472, %v445_v15 }
  0x67   :  { %v321_v19 = vsub.f32 3.218876, %v320_v16  ;;  %v447_v21 = vpop.eup %446 }
  0x68   :  { %v343_v23 = vmul.f32 0.6931472, %v447_v21 }
  0x69   :  { %v395_v22 = vadd.f32 -0.5, %v321_v19 }
  0x6a   :  { %v344_v28 = vsub.f32 0.0, %v343_v23 }
  0x6b   :  { %v323_v24 = vadd.f32 %v395_v22, %v302_v3 }
  0x6c   :  { %v398_v32 = vadd.f32 -0.5, %v344_v28 }
  0x6d   :  { %v396_v29 = vadd.f32 1.3862944, %v323_v24 }
  0x6e   :  { %v349_v37 = vadd.f32 %v398_v32, %v348_v34 }
  0x6f   :  { %v327_v30 = vadd.f32 %v396_v29, %v326_v25 }
  0x70   :  { %v351_v39 = vsel %vm350_vm7, %v349_v37, 0.0 }
  0x71   :  { %v328_v35 = vmul.f32 %v664_v33, %v327_v30 }
  0x73   :  { %v331_v36 = vadd.f32 %v330_v31, %v328_v35 }
  0x75   :  { %v332_v38 = vsel %vm285_vm6, %v331_v36, 0.0 }
  0x76   :  { %333 = vadd.xlane.f32.xlu0 %v332_v38 }
  0x7a   :  { %352 = vadd.xlane.f32.xlu0 %v351_v39 }
 0x103   :  { %v334_v41 = vpop.xlane.xlu0 %333 }
 0x104   :  { %v335_v42 = vrot.slane %v334_v41, 4 }
 0x106   :  { %v336_v43 = vadd.f32 %v335_v42, %v334_v41 }
 0x107   :  { %v353_v44 = vpop.xlane.xlu0 %352 }
 0x108   :  { %v337_v45 = vrot.slane %v336_v43, 2  ;;  %v354_v46 = vrot.slane %v353_v44, 4 }
 0x10a   :  { %v355_v40 = vadd.f32 %v354_v46, %v353_v44  ;;  %v338_v47 = vadd.f32 %v337_v45, %v336_v43 }
 0x10c   :  { %v356_v48 = vrot.slane %v355_v40, 2  ;;  %v339_v49 = vrot.slane %v338_v47, 1 }
 0x10e   :  { %v357_v33 = vadd.f32 %v356_v48, %v355_v40  ;;  %v340_v50 = vadd.f32 %v339_v49, %v338_v47 }
 0x110   :  { %413 = vpush %v340_v50  ;;  %v358_v51 = vrot.slane %v357_v33, 1 }
 0x112   :  { %v359_v52 = vadd.f32 %v358_v51, %v357_v33 }
 0x114   :  { %415 = vpush %v359_v52 }
 0x129   :  { %v190_v55 = vpop.f32.mrb[0].mxu0 }
 0x12a   :  { %v407_v56 = vpop.f32.mrb[1].mxu0  ;;  %v191_v5 = vadd.f32 %v190_v55, %v118_v62 }
 0x134   :  { %v271_v59 = vpop.f32.mrb[0].mxu1 }
 0x135   :  { %v272_v60 = vadd.f32 %v271_v59, %v200_v58  ;;  %v412_v61 = vpop.f32.mrb[1].mxu1 }
 0x137   :  { %448 = vrsqrt.f32 %v272_v60  ;;  %vm277_vm8 = vcmp.eq.f32.partialorder %v272_v60, inf  ;;  %v280_v1 = vand.u32 2147483648, %v272_v60  ;;  %vm279_vm9 = vcmp.eq.f32.partialorder %v272_v60, 0.0 }
 0x141   :  { %v449_v63 = vpop.eup %448  ;;  %s414_s21 = spop %413 }
 0x142   :  { %v276_v0 = vmul.f32 %v449_v63, %v272_v60 }
 0x144   :  { %v278_v6 = vsel %vm277_vm8, %v272_v60, %v276_v0 }
 0x145   :  { %v281_v7 = vsel %vm279_vm9, %v280_v1, %v278_v6  ;;  %s416_s22 = spop %415 }
 0x146   :  { %v283_v8 = vmul.f32 %v282_v4, %v281_v7  ;;  %s361_s25 = sadd.f32 %s416_s22, %s414_s21 }
 0x148   :  { %v284_v9 = vadd.f32 %v283_v8, %v191_v5  ;;  %363 = sst [smem:[#allocation10]] %s361_s25 }
 0x149   :  { %525 = shalt.err (!%p522_p12)
}
 0x14a   :  { %s562_s10 = smov [#allocation10]   ;;  %286 = vst.msk [vmem:[#allocation9] sm:$0xff] %vm285_vm6, %v284_v9  ;;  %s526_s13 = scalar_lea.vmem %s371_s24, 128 }
 0x14b   :  { %381 = dma.smem_to_hbm %s562_s10, 16, %s726_s8, [#allocation5]  }
 0x14c   :  { %p527_p13 = scmp.ne.s32.totalorder %s371_s24, %s526_s13  ;;  %p531_p0 = scmp.lt.s32.totalorder %s371_s24, %s371_s24 }
 0x14d   :  { %p532_p1 = scmp.lt.s32.totalorder %s526_s13, %s526_s13 }
 0x14f   :  { %p533_p2 = por %p532_p1, %p531_p0 }
 0x151   :  { %p534_p3 = pnand %p533_p2, %p527_p13 }
 0x153   :  { %537 = shalt.err (!%p534_p3)
}
 0x154   :  { %s538_s16 = scalar_lea.hbm %s725_s7, 128 }
 0x155   :  { %p539_p4 = scmp.ne.s32.totalorder %s725_s7, %s538_s16  ;;  %p542_p5 = scmp.lt.u32.totalorder %s538_s16, %s725_s7 }
 0x157   :  { %p544_p6 = pnand %p542_p5, %p539_p4 }
 0x159   :  { %547 = shalt.err (!%p544_p6)
}
 0x15a   :  { %373 = dma.vmem_to_hbm [thread:$0]  %s371_s24, 128, %s725_s7, [#allocation4]  }
 0x15b   :  { %552 = dma.done.wait [#allocation4], 128  }
 0x15c   :  { %553 = vsyncadd [#allocation4], 4294967168 }
 0x15d   :  { %554 = dma.done.wait [#allocation5], 16  }
 0x15e   :  { %555 = vsyncadd [#allocation5], 4294967280 }
 0x15f   :  { %388 = sfence }
 0x160   :  { %389 = vsyncpa [#allocation3], 1 }
 0x161   :  { %390 = vsyncpa [#allocation7], 1 }
 0x162   :  { %391 = vsyncpa [#allocation4], 1 }
 0x163   :  { %392 = vsyncpa [#allocation5], 1 }

</bundles_post_ra>
